<compile_context>
chip_gen: v7x
topology: tpu7x:2x2x1
jax: 0.10.0
libtpu: 0.0.40
codegen_flags: <defaults>
</compile_context>

<pallas_src>
import jax
import jax.numpy as jnp
from jax import lax
from jax.experimental import pallas as pl
from jax.experimental.pallas import tpu as pltpu

_TB = 1024                       # max batch-tile rows (output lanes), mult of 128
_TK = 2048                       # max feature-tile cols, mult of 128
_W_RESIDENT_BYTES = 4 * 1024 * 1024   # keep W fully VMEM-resident below this


def _cdiv(a: int, b: int) -> int:
    return -(-a // b)


def _round_up(n: int, m: int) -> int:
    return _cdiv(n, m) * m


def _make_kernel(d_total: int, tk: int, nk: int, w_resident: bool):
    """Kernel closure over static shape facts (D, tile sizes, W residency)."""

    def kernel(x_ref, w_ref, b_ref, o_ref):
        # x_ref: (tb, tk) VMEM (native dtype)   w_ref: (1, dp|tk) VMEM
        # b_ref: (1,) SMEM f32                  o_ref: (1, tb) f32 (accumulator)
        k = pl.program_id(1)

        @pl.when(k == 0)
        def _init():
            # Fold the bias into the accumulator init -> no finalize branch.
            o_ref[...] = jnp.zeros_like(o_ref) + b_ref[0]

        x = x_ref[...]                                       # (tb, tk)
        if d_total % tk != 0:
            # K tail of the last block reads out-of-bounds VMEM (unspecified,
            # possibly NaN) -> zero those columns.  Static no-op otherwise.
            col = k * tk + lax.broadcasted_iota(jnp.int32, x.shape, 1)
            x = jnp.where(col < d_total, x, jnp.zeros_like(x))

        if w_resident and nk > 1:
            # W is fully resident in VMEM; take this K-step's slice.
            off = pl.multiple_of(k * tk, tk)
            w = w_ref[:, pl.ds(off, tk)]                     # (1, tk)
        else:
            w = w_ref[...]                                   # (1, tk)

        # (1, tk) . (tb, tk)^T -> (1, tb): partial sums land lane-dense
        # (batch on lanes), accumulated in f32 directly in the output block
        # (out index map is k-invariant -> block stays resident).
        o_ref[...] += lax.dot_general(
            w, x,
            dimension_numbers=(((1,), (1,)), ((), ())),
            preferred_element_type=jnp.float32,
        )

    return kernel


@jax.jit
def linear_regression_forward(x, weight, bias):
    """Equivalent of nn.Linear(input_dim, 1): y = x @ weight.T + bias."""
    B, D = x.shape
    itemsize = jnp.dtype(x.dtype).itemsize

    # ---- batch tile: aim for >=2 tiles (both v7x TCs) when B allows --------
    if B <= _TB:
        tb = _round_up(_cdiv(B, 2), 128)     # 128-mult keeps out block legal
        if tb >= B:
            tb = B                           # single full-extent tile
    else:
        tb = _TB
    nb = _cdiv(B, tb)

    # ---- feature (reduction) tile: no padding of x; tail masked in-kernel --
    if D <= _TK:
        tk, nk = D, 1
    else:
        tk, nk = _TK, _cdiv(D, _TK)
    dp = nk * tk

    # W in x's dtype (no in-kernel cast / extra VMEM copy); zero-pad its tiny
    # K tail so resident-W tail bytes are well-defined zeros.
    w = weight.astype(x.dtype)
    if dp != D:
        w = jnp.pad(w, ((0, 0), (0, dp - D)))
    b = bias.astype(jnp.float32).reshape((1,))               # SMEM scalar

    w_resident = dp * itemsize <= _W_RESIDENT_BYTES
    if w_resident:
        w_spec = pl.BlockSpec((1, dp), lambda i, k: (0, 0))  # DMA'd once
    else:
        w_spec = pl.BlockSpec((1, tk), lambda i, k: (0, k))  # per-K-step tile

    out = pl.pallas_call(
        _make_kernel(D, tk, nk, w_resident),
        out_shape=jax.ShapeDtypeStruct((1, B), jnp.float32),  # lane-dense row
        grid_spec=pltpu.PrefetchScalarGridSpec(
            num_scalar_prefetch=0,
            grid=(nb, nk),                                    # K innermost
            in_specs=[
                pl.BlockSpec((tb, tk), lambda i, k: (i, k)),  # x stream
                w_spec,
                pl.BlockSpec(memory_space=pltpu.SMEM),        # bias scalar
            ],
            out_specs=pl.BlockSpec((1, tb), lambda i, k: (0, i)),
        ),
        compiler_params=pltpu.CompilerParams(
            # batch axis -> both TensorCores on v7x; K axis is the reduction.
            dimension_semantics=("parallel", "arbitrary"),
            vmem_limit_bytes=48 * 1024 * 1024,
        ),
        cost_estimate=pl.CostEstimate(
            flops=2 * B * D,
            bytes_accessed=(B * D + D) * itemsize + B * 4 + 4,
            transcendentals=0,
        ),
    )(x, w, b)

    # (1, B) f32 -> (B, 1) in the input dtype (matches nn.Linear semantics).
    return out.reshape(B, 1).astype(x.dtype)


if __name__ == "__main__":
    key = jax.random.PRNGKey(0)
    kx, kw, kb = jax.random.split(key, 3)

    # ---- primary check: small shapes implied by the module ------------------
    batch, input_dim = 8, 32
    x = jax.random.normal(kx, (batch, input_dim), dtype=jnp.float32)
    bound = 1.0 / (input_dim ** 0.5)           # nn.Linear default init range
    weight = jax.random.uniform(kw, (1, input_dim), jnp.float32, -bound, bound)
    bias = jax.random.uniform(kb, (1,), jnp.float32, -bound, bound)

    out = linear_regression_forward(x, weight, bias)
    jax.block_until_ready(out)
    ref = x @ weight.T + bias
    assert out.shape == (batch, 1), out.shape
    assert jnp.allclose(out, ref, atol=1e-5, rtol=1e-5), "mismatch vs reference"

    # ---- ragged B and D (single tile per axis, no padding path) -------------
    x2 = jax.random.normal(kx, (13, 40), dtype=jnp.float32)
    w2 = jax.random.uniform(kw, (1, 40), jnp.float32, -0.2, 0.2)
    b2 = jax.random.uniform(kb, (1,), jnp.float32, -0.2, 0.2)
    out2 = linear_regression_forward(x2, w2, b2)
    jax.block_until_ready(out2)
    ref2 = x2 @ w2.T + b2
    assert out2.shape == (13, 1), out2.shape
    assert jnp.allclose(out2, ref2, atol=1e-5, rtol=1e-5), "mismatch (ragged)"

    # ---- multi-tile path: nb=2 batch tiles, nk=2 K tiles with masked K tail -
    B3, D3 = 300, 2100
    x3 = jax.random.normal(kx, (B3, D3), dtype=jnp.float32)
    bound3 = 1.0 / (D3 ** 0.5)
    w3 = jax.random.uniform(kw, (1, D3), jnp.float32, -bound3, bound3)
    b3 = jax.random.uniform(kb, (1,), jnp.float32, -bound3, bound3)
    out3 = linear_regression_forward(x3, w3, b3)
    jax.block_until_ready(out3)
    ref3 = jnp.dot(x3, w3.T, precision=lax.Precision.HIGHEST) + b3
    assert out3.shape == (B3, 1), out3.shape
    assert jnp.allclose(out3, ref3, atol=1e-2, rtol=1e-2), "mismatch (tiled)"

    print("KERNEL_OK")
</pallas_src>

<mosaic_0001>
module attributes {stable_mosaic.version = 11 : i64} {
  func.func @kernel(%arg0: i32, %arg1: i32, %arg2: memref<8x32xf32, #tpu.memory_space<vmem>>, %arg3: memref<1x32xf32, #tpu.memory_space<vmem>>, %arg4: memref<1xf32, #tpu.memory_space<smem>>, %arg5: memref<1x8xf32, #tpu.memory_space<vmem>>) attributes {dimension_semantics = [#tpu.dimension_semantics<parallel>, #tpu.dimension_semantics<arbitrary>], iteration_bounds = array<i64: 1, 1>, scalar_prefetch = 0 : i64, scratch_operands = 0 : i64, tpu.core_type = #tpu.core_type<tc>, window_params = [{transform_indices = @transform_0, window_bounds = array<i64: 8, 32>}, {pipeline_mode = #tpu.pipeline_mode<synchronous>, transform_indices = @transform_1, window_bounds = array<i64: 1, 32>}, {transform_indices = @transform_2, window_bounds = array<i64: 1>}, {transform_indices = @transform_3, window_bounds = array<i64: 1, 8>}]} {
    %c0_i32 = arith.constant 0 : i32
    %0 = arith.cmpi eq, %arg1, %c0_i32 : i32
    %1 = arith.extui %0 : i1 to i32
    %c0_i32_0 = arith.constant 0 : i32
    %2 = arith.cmpi ne, %1, %c0_i32_0 : i32
    scf.if %2 {
      %cst_8 = arith.constant 0.000000e+00 : f32
      %9 = vector.broadcast %cst_8 : f32 to vector<1x8xf32>
      %c0_9 = arith.constant 0 : index
      %10 = memref.load %arg4[%c0_9] : memref<1xf32, #tpu.memory_space<smem>>
      %11 = vector.broadcast %10 : f32 to vector<1x8xf32>
      %12 = arith.addf %9, %11 : vector<1x8xf32>
      %c0_10 = arith.constant 0 : index
      %c0_11 = arith.constant 0 : index
      %13 = vector.load %arg5[%c0_10, %c0_11] : memref<1x8xf32, #tpu.memory_space<vmem>>, vector<1x8xf32>
      tpu.vector_store %arg5[%c0_10, %c0_11], %12 {strides = array<i32>} : memref<1x8xf32, #tpu.memory_space<vmem>>, vector<1x8xf32>,
    } else {
    }
    %c0 = arith.constant 0 : index
    %c0_1 = arith.constant 0 : index
    %3 = vector.load %arg2[%c0, %c0_1] : memref<8x32xf32, #tpu.memory_space<vmem>>, vector<8x32xf32>
    %c0_2 = arith.constant 0 : index
    %c0_3 = arith.constant 0 : index
    %4 = vector.load %arg3[%c0_2, %c0_3] : memref<1x32xf32, #tpu.memory_space<vmem>>, vector<1x32xf32>
    %c0_4 = arith.constant 0 : index
    %c0_5 = arith.constant 0 : index
    %5 = vector.load %arg5[%c0_4, %c0_5] : memref<1x8xf32, #tpu.memory_space<vmem>>, vector<1x8xf32>
    %cst = arith.constant dense<0.000000e+00> : vector<1x8xf32>
    %6 = tpu.matmul %4, %3, %cst {dimension_numbers = #tpu.dot_dimension_numbers<[1], [1], [0], [0], [0, 0, 1, 0], [], []>} : vector<1x32xf32>, vector<8x32xf32>, vector<1x8xf32> -> vector<1x8xf32>
    %7 = arith.addf %5, %6 : vector<1x8xf32>
    %c0_6 = arith.constant 0 : index
    %c0_7 = arith.constant 0 : index
    %8 = vector.load %arg5[%c0_6, %c0_7] : memref<1x8xf32, #tpu.memory_space<vmem>>, vector<1x8xf32>
    tpu.vector_store %arg5[%c0_6, %c0_7], %7 {strides = array<i32>} : memref<1x8xf32, #tpu.memory_space<vmem>>, vector<1x8xf32>,
    return
  }
  func.func @transform_0(%arg0: i32, %arg1: i32) -> (i32, i32) {
    %c0_i32 = arith.constant 0 : i32
    return %arg0, %arg1 : i32, i32
  }
  func.func @transform_1(%arg0: i32, %arg1: i32) -> (i32, i32) {
    %c0_i32 = arith.constant 0 : i32
    %c0_i32_0 = arith.constant 0 : i32
    %c0_i32_1 = arith.constant 0 : i32
    return %c0_i32, %c0_i32_0 : i32, i32
  }
  func.func @transform_2(%arg0: i32, %arg1: i32) -> i32 {
    %c0_i32 = arith.constant 0 : i32
    %c0_i32_0 = arith.constant 0 : i32
    return %c0_i32 : i32
  }
  func.func @transform_3(%arg0: i32, %arg1: i32) -> (i32, i32) {
    %c0_i32 = arith.constant 0 : i32
    %c0_i32_0 = arith.constant 0 : i32
    return %c0_i32, %arg0 : i32, i32
  }
}

</mosaic_0001>

<bundles_post_ra>
// kernel: linear_regression_forward.1
= control target key start
LH: loop header
LB: loop body
LE: loop exit
PB: predicated region body
PF: predicated region fallthrough
CT: control target
= control target key end

     0   :  { %9 = vsyncpa [#allocation4], 0  ;;  %s252_s0 = inlined_call_operand.hbm [shape: f32[8,32], index: 0, kind: input, shape index: {}]   ;;  %s253_s1 = inlined_call_operand.vmem [shape: f32[1,32], index: 1, kind: input, shape index: {}]   ;;  %s254_s2 = inlined_call_operand.<no memory space> [shape: f32[1], index: 2, kind: input, shape index: {}]   ;;  %s255_s3 = inlined_call_operand.hbm [shape: f32[1,8], index: 3, kind: output, shape index: {}]  }
   0x1   :  { %10 = vsyncpa [#allocation5], 0  ;;  %s196_s12 = smov [#allocation3]   ;;  %s148_s16 = scalar_lea.hbm %s252_s0, 128 }
   0x2   :  { %s17_s13 = sshll.u32 %s196_s12, 4  ;;  %p149_p0 = scmp.ne.s32.totalorder %s252_s0, %s148_s16  ;;  %s18_s13 = int_to_ptr.vmem [resolvable:$true] %s17_s13 }
   0x3   :  { %p152_p1 = scmp.lt.u32.totalorder %s148_s16, %s252_s0 }
   0x5   :  { %p154_p2 = pnand %p152_p1, %p149_p0 }
   0x7   :  { %157 = shalt.err (!%p154_p2)
}
   0x8   :  { %s158_s21 = scalar_lea.vmem %s18_s13, 128  ;;  %p163_p4 = scmp.lt.s32.totalorder %s18_s13, %s18_s13 }
   0x9   :  { %p159_p3 = scmp.ne.s32.totalorder %s18_s13, %s158_s21  ;;  %p164_p5 = scmp.lt.s32.totalorder %s158_s21, %s158_s21 }
   0xb   :  { %p165_p6 = por %p164_p5, %p163_p4 }
   0xd   :  { %p166_p7 = pnand %p165_p6, %p159_p3 }
   0xf   :  { %169 = shalt.err (!%p166_p7)
}
  0x10   :  { %20 = dma.hbm_to_vmem [thread:$0]  %s252_s0, 128, %s18_s13, [#allocation4]  }
  0x11   :  { %192 = dma.done.wait [#allocation4], 128  }
  0x12   :  { %193 = vsyncadd [#allocation4], 4294967168  ;;  %v33_v0 = vstv %s254_s2  ;;  %vm35_vm0 = vcmask 57344   ;;  %v197_v1 = vmov 0.0   ;;  %vm198_vm1 = vmmov 0   ;;  %v37_v2 = vld [vmem:[#allocation3] sm:$0xff] }
  0x13   :  { %36 = vst.msk [vmem:[#allocation6] sm:$0x1] %vm35_vm0, %v33_v0  ;;  %139 = vmatprep.subr.mxu0 %v197_v1  ;;  %141 = vmatprep.mubr.msk.f32.mxu0 %vm198_vm1, %v197_v1  ;;  %vm40_vm2 = vcmask 261120   ;;  %v38_v3 = vld [vmem:[%s253_s1] sm:$0x1]  ;;  %s199_s0 = smov [#allocation6]  }
  0x14   :  { %140 = vmatpush3.xpose.msk.msra.mxu0 %vm40_vm2, %v37_v2  ;;  %s126_s28 = sshll.u32 %s199_s0, 4  ;;  %s127_s28 = int_to_ptr.vmem [resolvable:$true] %s126_s28 }
  0x15   :  { %s170_s2 = scalar_lea.vmem %s127_s28, 16  ;;  %s174_s29 = scalar_lea.vmem %s127_s28, 32 }
  0x16   :  { %p171_p8 = scmp.ne.s32.totalorder %s127_s28, %s170_s2  ;;  %p175_p9 = scmp.lt.s32.totalorder %s127_s28, %s127_s28 }
  0x17   :  { %142 = vmatmul.mubr.msk.f32.vlgmr.msra.gmra.mrb[0].mxu0 %vm40_vm2, %v38_v3  ;;  %p176_p10 = scmp.lt.s32.totalorder %s174_s29, %s170_s2 }
  0x19   :  { %p177_p11 = por %p176_p10, %p175_p9 }
  0x1a   :  { %v39_v4 = vld [vmem:[#allocation6] sm:$0x1] }
  0x1b   :  { %p178_p12 = pnand %p177_p11, %p171_p8 }
  0xea   :  { %v113_v5 = vpop.f32.mrb[0].mxu0 }
  0xeb   :  { %v117_v6 = vadd.f32 %v113_v5, %v39_v4  ;;  %v143_v7 = vpop.f32.mrb[1].mxu0 }
  0xed   :  { %119 = vst.msk [vmem:[#allocation6] sm:$0x1] %vm35_vm0, %v117_v6 }
  0xee   :  { %181 = shalt.err (!%p178_p12)
}
  0xef   :  { %s182_s4 = scalar_lea.hbm %s255_s3, 16 }
  0xf0   :  { %p183_p13 = scmp.ne.s32.totalorder %s255_s3, %s182_s4  ;;  %p186_p0 = scmp.lt.u32.totalorder %s182_s4, %s255_s3 }
  0xf2   :  { %p188_p1 = pnand %p186_p0, %p183_p13 }
  0xf4   :  { %191 = shalt.err (!%p188_p1)
}
  0xf5   :  { %129 = dma.vmem_to_hbm [thread:$0]  %s127_s28, 16, %s255_s3, [#allocation5]  }
  0xf6   :  { %194 = dma.done.wait [#allocation5], 16  }
  0xf7   :  { %195 = vsyncadd [#allocation5], 4294967280 }
  0xf8   :  { %133 = vsyncpa [#allocation4], 1 }
  0xf9   :  { %134 = vsyncpa [#allocation5], 1 }

</bundles_post_ra>
